<compile_context>
chip_gen: v5e
topology: v5e:2x2
jax: 0.10.0
libtpu: 0.0.40
codegen_flags: <defaults>
</compile_context>

<pallas_src>
import jax
import jax.numpy as jnp
from jax.experimental import pallas as pl
from jax.experimental.pallas import tpu as pltpu

LANE = 128


def _round_up(n, m):
    return ((n + m - 1) // m) * m


def mlp_kernel(x_ref, w1_ref, b1_ref, w2_ref, b2_ref, w3_ref, b3_ref, o_ref):
    # Linear(32, 64) + ReLU  -- bf16 operands, f32 accumulation
    h1 = jnp.dot(x_ref[...], w1_ref[...], preferred_element_type=jnp.float32)
    h1 = jnp.maximum(h1 + b1_ref[...], 0.0)
    # Linear(64, 64) + SiLU (x * sigmoid(x)), elementwise math in f32
    h2 = jnp.dot(h1.astype(jnp.bfloat16), w2_ref[...],
                 preferred_element_type=jnp.float32)
    h2 = h2 + b2_ref[...]
    h2 = h2 * jax.nn.sigmoid(h2)
    # Linear(64, 128)  (last layer zero-padded to 128 lanes -> lane-dense store)
    out = jnp.dot(h2.astype(jnp.bfloat16), w3_ref[...],
                  preferred_element_type=jnp.float32)
    o_ref[...] = (out + b3_ref[...]).astype(o_ref.dtype)


def mlp_forward(x, params, *, batch_tile=1024):
    """x: (B, D_in) float32. params: dict of (in, out)-transposed weights/biases."""
    B, D_in = x.shape
    w1 = params["w1"].astype(jnp.bfloat16)
    b1 = params["b1"].astype(jnp.float32)
    w2 = params["w2"].astype(jnp.bfloat16)
    b2 = params["b2"].astype(jnp.float32)
    H1 = w1.shape[1]
    H2 = w2.shape[1]
    D_out = params["w3"].shape[1]

    # Lane-dense output: pad last Linear to a multiple of 128 output columns
    # (zero columns; biases folded into the same padded layout).
    N_pad = _round_up(D_out, LANE)
    w3p = jnp.zeros((H2, N_pad), jnp.bfloat16)
    w3p = w3p.at[:, :D_out].set(params["w3"].astype(jnp.bfloat16))
    b3p = jnp.zeros((1, N_pad), jnp.float32)
    b3p = b3p.at[:, :D_out].set(params["b3"].astype(jnp.float32))

    # Large batch tile; pad ragged batches instead of asserting.
    bt = min(batch_tile, _round_up(B, 8))
    B_pad = _round_up(B, bt)
    x_p = x.astype(jnp.bfloat16)
    if B_pad != B:
        x_p = jnp.pad(x_p, ((0, B_pad - B), (0, 0)))
    grid = (B_pad // bt,)

    rep = lambda i: (0, 0)  # weights/biases: same block every step (no re-DMA)

    out_padded = pl.pallas_call(
        mlp_kernel,
        out_shape=jax.ShapeDtypeStruct((B_pad, N_pad), jnp.float32),
        grid_spec=pltpu.PrefetchScalarGridSpec(
            num_scalar_prefetch=0,
            grid=grid,
            in_specs=[
                pl.BlockSpec((bt, D_in), lambda i: (i, 0)),
                pl.BlockSpec((D_in, H1), rep),
                pl.BlockSpec((1, H1), rep),
                pl.BlockSpec((H1, H2), rep),
                pl.BlockSpec((1, H2), rep),
                pl.BlockSpec((H2, N_pad), rep),
                pl.BlockSpec((1, N_pad), rep),
            ],
            out_specs=pl.BlockSpec((bt, N_pad), lambda i: (i, 0)),
        ),
        compiler_params=pltpu.CompilerParams(
            dimension_semantics=("parallel",),
            vmem_limit_bytes=64 * 1024 * 1024,
        ),
    )(x_p, w1, b1, w2, b2, w3p, b3p)

    return out_padded[:B, :D_out]


def init_params(key, d_in=32, h1=64, h2=64, d_out=16):
    """Deterministic synthetic init; weights already transposed to (in, out)."""
    ks = jax.random.split(key, 6)
    w1 = jax.random.normal(ks[0], (d_in, h1), jnp.float32) * (1.0 / d_in ** 0.5)
    b1 = jax.random.normal(ks[1], (1, h1), jnp.float32) * 0.01
    w2 = jax.random.normal(ks[2], (h1, h2), jnp.float32) * (1.0 / h1 ** 0.5)
    b2 = jax.random.normal(ks[3], (1, h2), jnp.float32) * 0.01
    w3 = jax.random.normal(ks[4], (h2, d_out), jnp.float32) * (1.0 / h2 ** 0.5)
    b3 = jax.random.normal(ks[5], (1, d_out), jnp.float32) * 0.01
    return dict(w1=w1, b1=b1, w2=w2, b2=b2, w3=w3, b3=b3)


def mlp_reference_f32(x, p):
    h1 = jnp.maximum(x @ p["w1"] + p["b1"], 0.0)
    h2 = h1 @ p["w2"] + p["b2"]
    h2 = h2 * jax.nn.sigmoid(h2)
    return h2 @ p["w3"] + p["b3"]


def mlp_reference_bf16(x, p):
    """Same math as the kernel: bf16 operands, f32 accumulation."""
    def dot(a, b):
        return jnp.dot(a.astype(jnp.bfloat16), b.astype(jnp.bfloat16),
                       preferred_element_type=jnp.float32)
    h1 = jnp.maximum(dot(x, p["w1"]) + p["b1"], 0.0)
    h2 = dot(h1, p["w2"]) + p["b2"]
    h2 = h2 * jax.nn.sigmoid(h2)
    return dot(h2, p["w3"]) + p["b3"]


if __name__ == "__main__":
    key = jax.random.PRNGKey(0)
    k_x, k_p = jax.random.split(key)

    D_in, H1, H2, D_out = 32, 64, 64, 16
    params = init_params(k_p, d_in=D_in, h1=H1, h2=H2, d_out=D_out)

    # Case 1: batch that is a multiple of 8
    B = 64
    x = jax.random.normal(k_x, (B, D_in), jnp.float32)
    out = jax.block_until_ready(mlp_forward(x, params))
    assert out.shape == (B, D_out)
    ref_bf16 = mlp_reference_bf16(x, params)
    ref_f32 = mlp_reference_f32(x, params)
    assert jnp.allclose(out, ref_bf16, atol=2e-3, rtol=2e-3), "mismatch vs bf16 reference"
    assert jnp.allclose(out, ref_f32, atol=5e-2, rtol=5e-2), "mismatch vs f32 reference"

    # Case 2: ragged batch (exercises the padding path, no assert)
    B2 = 50
    x2 = jax.random.normal(jax.random.PRNGKey(1), (B2, D_in), jnp.float32)
    out2 = jax.block_until_ready(mlp_forward(x2, params))
    assert out2.shape == (B2, D_out)
    assert jnp.allclose(out2, mlp_reference_bf16(x2, params), atol=2e-3, rtol=2e-3)

    print("KERNEL_OK")
</pallas_src>

<mosaic_0001>
module attributes {stable_mosaic.version = 11 : i64} {
  func.func @mlp_kernel(%arg0: i32, %arg1: memref<64x32xbf16, #tpu.memory_space<vmem>>, %arg2: memref<32x64xbf16, #tpu.memory_space<vmem>>, %arg3: memref<1x64xf32, #tpu.memory_space<vmem>>, %arg4: memref<64x64xbf16, #tpu.memory_space<vmem>>, %arg5: memref<1x64xf32, #tpu.memory_space<vmem>>, %arg6: memref<64x128xbf16, #tpu.memory_space<vmem>>, %arg7: memref<1x128xf32, #tpu.memory_space<vmem>>, %arg8: memref<64x128xf32, #tpu.memory_space<vmem>>) attributes {dimension_semantics = [#tpu.dimension_semantics<parallel>], iteration_bounds = array<i64: 1>, scalar_prefetch = 0 : i64, scratch_operands = 0 : i64, tpu.core_type = #tpu.core_type<tc>, window_params = [{transform_indices = @transform_0, window_bounds = array<i64: 64, 32>}, {pipeline_mode = #tpu.pipeline_mode<synchronous>, transform_indices = @transform_1, window_bounds = array<i64: 32, 64>}, {pipeline_mode = #tpu.pipeline_mode<synchronous>, transform_indices = @transform_2, window_bounds = array<i64: 1, 64>}, {pipeline_mode = #tpu.pipeline_mode<synchronous>, transform_indices = @transform_3, window_bounds = array<i64: 64, 64>}, {pipeline_mode = #tpu.pipeline_mode<synchronous>, transform_indices = @transform_4, window_bounds = array<i64: 1, 64>}, {pipeline_mode = #tpu.pipeline_mode<synchronous>, transform_indices = @transform_5, window_bounds = array<i64: 64, 128>}, {pipeline_mode = #tpu.pipeline_mode<synchronous>, transform_indices = @transform_6, window_bounds = array<i64: 1, 128>}, {transform_indices = @transform_7, window_bounds = array<i64: 64, 128>}]} {
    %c0 = arith.constant 0 : index
    %c0_0 = arith.constant 0 : index
    %0 = vector.load %arg1[%c0, %c0_0] : memref<64x32xbf16, #tpu.memory_space<vmem>>, vector<64x32xbf16>
    %c0_1 = arith.constant 0 : index
    %c0_2 = arith.constant 0 : index
    %1 = vector.load %arg2[%c0_1, %c0_2] : memref<32x64xbf16, #tpu.memory_space<vmem>>, vector<32x64xbf16>
    %cst = arith.constant dense<0.000000e+00> : vector<64x64xf32>
    %2 = tpu.matmul %0, %1, %cst {dimension_numbers = #tpu.dot_dimension_numbers<[1], [0], [0], [1], [0, 0, 1, 1], [], []>} : vector<64x32xbf16>, vector<32x64xbf16>, vector<64x64xf32> -> vector<64x64xf32>
    %c0_3 = arith.constant 0 : index
    %c0_4 = arith.constant 0 : index
    %3 = vector.load %arg3[%c0_3, %c0_4] : memref<1x64xf32, #tpu.memory_space<vmem>>, vector<1x64xf32>
    %4 = vector.broadcast %3 : vector<1x64xf32> to vector<64x64xf32>
    %5 = arith.addf %2, %4 : vector<64x64xf32>
    %cst_5 = arith.constant 0.000000e+00 : f32
    %6 = vector.broadcast %cst_5 : f32 to vector<64x64xf32>
    %7 = arith.maximumf %5, %6 : vector<64x64xf32>
    %8 = arith.truncf %7 : vector<64x64xf32> to vector<64x64xbf16>
    %c0_6 = arith.constant 0 : index
    %c0_7 = arith.constant 0 : index
    %9 = vector.load %arg4[%c0_6, %c0_7] : memref<64x64xbf16, #tpu.memory_space<vmem>>, vector<64x64xbf16>
    %cst_8 = arith.constant dense<0.000000e+00> : vector<64x64xf32>
    %10 = tpu.matmul %8, %9, %cst_8 {dimension_numbers = #tpu.dot_dimension_numbers<[1], [0], [0], [1], [0, 0, 1, 1], [], []>} : vector<64x64xbf16>, vector<64x64xbf16>, vector<64x64xf32> -> vector<64x64xf32>
    %c0_9 = arith.constant 0 : index
    %c0_10 = arith.constant 0 : index
    %11 = vector.load %arg5[%c0_9, %c0_10] : memref<1x64xf32, #tpu.memory_space<vmem>>, vector<1x64xf32>
    %12 = vector.broadcast %11 : vector<1x64xf32> to vector<64x64xf32>
    %13 = arith.addf %10, %12 : vector<64x64xf32>
    %14 = arith.negf %13 : vector<64x64xf32>
    %15 = math.exp %14 : vector<64x64xf32>
    %cst_11 = arith.constant 1.000000e+00 : f32
    %16 = vector.broadcast %cst_11 : f32 to vector<64x64xf32>
    %17 = arith.addf %16, %15 : vector<64x64xf32>
    %18 = arith.divf %16, %17 : vector<64x64xf32>
    %19 = arith.mulf %13, %18 : vector<64x64xf32>
    %20 = arith.truncf %19 : vector<64x64xf32> to vector<64x64xbf16>
    %c0_12 = arith.constant 0 : index
    %c0_13 = arith.constant 0 : index
    %21 = vector.load %arg6[%c0_12, %c0_13] : memref<64x128xbf16, #tpu.memory_space<vmem>>, vector<64x128xbf16>
    %cst_14 = arith.constant dense<0.000000e+00> : vector<64x128xf32>
    %22 = tpu.matmul %20, %21, %cst_14 {dimension_numbers = #tpu.dot_dimension_numbers<[1], [0], [0], [1], [0, 0, 1, 1], [], []>} : vector<64x64xbf16>, vector<64x128xbf16>, vector<64x128xf32> -> vector<64x128xf32>
    %c0_15 = arith.constant 0 : index
    %c0_16 = arith.constant 0 : index
    %23 = vector.load %arg7[%c0_15, %c0_16] : memref<1x128xf32, #tpu.memory_space<vmem>>, vector<1x128xf32>
    %24 = vector.broadcast %23 : vector<1x128xf32> to vector<64x128xf32>
    %25 = arith.addf %22, %24 : vector<64x128xf32>
    %c0_17 = arith.constant 0 : index
    %c0_18 = arith.constant 0 : index
    %26 = vector.load %arg8[%c0_17, %c0_18] : memref<64x128xf32, #tpu.memory_space<vmem>>, vector<64x128xf32>
    tpu.vector_store %arg8[%c0_17, %c0_18], %25 {strides = array<i32>} : memref<64x128xf32, #tpu.memory_space<vmem>>, vector<64x128xf32>,
    return
  }
  func.func @transform_0(%arg0: i32) -> (i32, i32) {
    %c0_i32 = arith.constant 0 : i32
    %c0_i32_0 = arith.constant 0 : i32
    return %arg0, %c0_i32 : i32, i32
  }
  func.func @transform_1(%arg0: i32) -> (i32, i32) {
    %c0_i32 = arith.constant 0 : i32
    %c0_i32_0 = arith.constant 0 : i32
    %c0_i32_1 = arith.constant 0 : i32
    return %c0_i32, %c0_i32_0 : i32, i32
  }
  func.func @transform_2(%arg0: i32) -> (i32, i32) {
    %c0_i32 = arith.constant 0 : i32
    %c0_i32_0 = arith.constant 0 : i32
    %c0_i32_1 = arith.constant 0 : i32
    return %c0_i32, %c0_i32_0 : i32, i32
  }
  func.func @transform_3(%arg0: i32) -> (i32, i32) {
    %c0_i32 = arith.constant 0 : i32
    %c0_i32_0 = arith.constant 0 : i32
    %c0_i32_1 = arith.constant 0 : i32
    return %c0_i32, %c0_i32_0 : i32, i32
  }
  func.func @transform_4(%arg0: i32) -> (i32, i32) {
    %c0_i32 = arith.constant 0 : i32
    %c0_i32_0 = arith.constant 0 : i32
    %c0_i32_1 = arith.constant 0 : i32
    return %c0_i32, %c0_i32_0 : i32, i32
  }
  func.func @transform_5(%arg0: i32) -> (i32, i32) {
    %c0_i32 = arith.constant 0 : i32
    %c0_i32_0 = arith.constant 0 : i32
    %c0_i32_1 = arith.constant 0 : i32
    return %c0_i32, %c0_i32_0 : i32, i32
  }
  func.func @transform_6(%arg0: i32) -> (i32, i32) {
    %c0_i32 = arith.constant 0 : i32
    %c0_i32_0 = arith.constant 0 : i32
    %c0_i32_1 = arith.constant 0 : i32
    return %c0_i32, %c0_i32_0 : i32, i32
  }
  func.func @transform_7(%arg0: i32) -> (i32, i32) {
    %c0_i32 = arith.constant 0 : i32
    %c0_i32_0 = arith.constant 0 : i32
    return %arg0, %c0_i32 : i32, i32
  }
}

</mosaic_0001>

<bundles_post_ra>
// kernel: tpu_custom_call.1
= control target key start
LH: loop header
LB: loop body
LE: loop exit
PB: predicated region body
PF: predicated region fallthrough
CT: control target
= control target key end

     0   :  { %12 = vsyncpa [#allocation3], 0  ;;  %s829_s0 = inlined_call_operand.vmem [shape: bf16[64,32], index: 0, kind: input, shape index: {}]   ;;  %s830_s1 = inlined_call_operand.vmem [shape: bf16[32,64], index: 1, kind: input, shape index: {}]   ;;  %s831_s2 = inlined_call_operand.vmem [shape: f32[1,64], index: 2, kind: input, shape index: {}]   ;;  %s832_s3 = inlined_call_operand.vmem [shape: bf16[64,64], index: 3, kind: input, shape index: {}]   ;;  %s833_s4 = inlined_call_operand.vmem [shape: f32[1,64], index: 4, kind: input, shape index: {}]   ;;  %s834_s5 = inlined_call_operand.hbm [shape: bf16[64,128], index: 5, kind: input, shape index: {}]   ;;  %s835_s6 = inlined_call_operand.vmem [shape: f32[1,128], index: 6, kind: input, shape index: {}]   ;;  %s836_s7 = inlined_call_operand.hbm [shape: f32[64,128], index: 7, kind: output, shape index: {}]  }
   0x1   :  { %13 = vsyncpa [#allocation4], 0  ;;  %s28_s26 = sshll.u32 %s834_s5, 4  ;;  %s683_s27 = smov [#allocation2]   ;;  %s29_s26 = int_to_ptr.hbm [resolvable:$true] %s28_s26 }
   0x2   :  { %s30_s28 = sshll.u32 %s683_s27, 4  ;;  %s684_s29 = smov 64   ;;  %s31_s28 = int_to_ptr.vmem [resolvable:$true] %s30_s28 }
   0x3   :  { %s685_s30 = smov 4  }
   0x4   :  { %36 = dma.hbm_to_vmem [thread:$0]  %s29_s26, 512, %s31_s28, [#allocation3], %s684_s29, %s684_s29, %s685_s30  }
   0x5   :  { %679 = dma.done.wait [#allocation3], 512  }
   0x6   :  { %680 = vsyncadd [#allocation3], 4294966784  ;;  %v573_v0 = vld [vmem:[%s830_s1 + $0x8] sm:$0xff]  ;;  %v572_v1 = vld [vmem:[%s830_s1] sm:$0xff]  ;;  %vm92_vm0 = vcmask 261120   ;;  %vm182_vm1 = vcmask 523264  }
   0x7   :  { %111 = vmatpush.bf16.msra.mxu0 %v573_v0  ;;  %v568_v2 = vld [vmem:[%s829_s0] sm:$0xff]  ;;  %v569_v3 = vld [vmem:[%s829_s0 + $0x8] sm:$0xff]  ;;  %v570_v4 = vld [vmem:[%s829_s0 + $0x10] sm:$0xff]  ;;  %s479_s8 = sshll.u32 %s836_s7, 4  ;;  %s687_s9 = smov 128   ;;  %s480_s8 = int_to_ptr.hbm [resolvable:$true] %s479_s8 }
   0x8   :  { %v571_v5 = vld [vmem:[%s829_s0 + $0x18] sm:$0xff]  ;;  %v576_v7 = vld [vmem:[%s832_s3 + $0x10] sm:$0xff]  ;;  %v575_v8 = vld [vmem:[%s832_s3 + $0x8] sm:$0xff]  ;;  %s688_s10 = smov 8  }
   0x9   :  { %v577_v6 = vld [vmem:[%s832_s3 + $0x18] sm:$0xff]  ;;  %v574_v9 = vld [vmem:[%s832_s3] sm:$0xff]  ;;  %v580_v41 = vld [vmem:[#allocation2 + $0x10] sm:$0xff] }
   0xa   :  { %199 = vmatpush.bf16.msra.mxu1 %v577_v6  ;;  %582 = vmatpush.bf16.msra.mxu3 %v577_v6  ;;  %v596_v11 = vld [vmem:[%s831_s2] ss:$0 sm:$0xff]  ;;  %v581_v39 = vld [vmem:[#allocation2 + $0x18] sm:$0xff]  ;;  %v579_v44 = vld [vmem:[#allocation2 + $0x8] sm:$0xff] }
   0xb   :  { %112 = vmatpush.bf16.msra.mxu0 %v572_v1  ;;  %586 = vmatpush.bf16.msra.mxu2 %v581_v39  ;;  %v772_v40 = vld [vmem:[%s833_s4] ss:$0 sm:$0xff] }
   0xc   :  { %v578_v46 = vld [vmem:[#allocation2] sm:$0xff] }
   0xe   :  { %516 = vmatmul.msk.bf16.vlgmr.msra.gmra.mxu0 %vm92_vm0, %v568_v2  ;;  %200 = vmatpush.bf16.msra.mxu1 %v576_v7 }
   0xf   :  { %583 = vmatpush.bf16.msra.mxu3 %v576_v7  ;;  %587 = vmatpush.bf16.msra.mxu2 %v580_v41 }
  0x12   :  { %201 = vmatpush.bf16.msra.mxu1 %v575_v8 }
  0x13   :  { %584 = vmatpush.bf16.msra.mxu3 %v575_v8  ;;  %588 = vmatpush.bf16.msra.mxu2 %v579_v44 }
  0x16   :  { %202 = vmatpush.bf16.msra.mxu1 %v574_v9 }
  0x17   :  { %585 = vmatpush.bf16.msra.mxu3 %v574_v9  ;;  %589 = vmatpush.bf16.msra.mxu2 %v578_v46 }
  0x1a   :  { %440 = vmatpush.bf16.msrb.mxu1 %v581_v39 }
  0x1e   :  { %517 = vmatmul.msk.bf16.gmra.mxu0 %vm92_vm0, %v569_v3  ;;  %441 = vmatpush.bf16.msrb.mxu1 %v580_v41 }
  0x22   :  { %442 = vmatpush.bf16.msrb.mxu1 %v579_v44 }
  0x26   :  { %443 = vmatpush.bf16.msrb.mxu1 %v578_v46 }
  0x2e   :  { %518 = vmatmul.msk.bf16.gmra.mxu0 %vm92_vm0, %v570_v4 }
  0x3e   :  { %519 = vmatmul.msk.bf16.gmra.mxu0 %vm92_vm0, %v571_v5 }
  0x8b   :  { %v114_v10 = vpop.f32.mrf.mxu0 }
  0x8c   :  { %v115_v12 = vadd.f32 %v596_v11, %v114_v10 }
  0x8e   :  { %v134_v15 = vmax.f32 %v115_v12, 0.0 }
  0x93   :  { %v116_v13 = vpop.f32.mrf.mxu0 }
  0x94   :  { %v117_v14 = vadd.f32 %v596_v11, %v116_v13 }
  0x96   :  { %v135_v16 = vmax.f32 %v117_v14, 0.0 }
  0x98   :  { %v142_v17 = vpack.c.bf16 %v135_v16, %v134_v15 }
  0x9a   :  { %536 = vmatmul.msk.bf16.vlgmr.msra.gmra.mxu1 %vm182_vm1, %v142_v17 }
  0x9b   :  { %v119_v18 = vpop.f32.mrf.mxu0 }
  0x9c   :  { %v120_v19 = vadd.f32 %v596_v11, %v119_v18 }
  0x9e   :  { %v136_v22 = vmax.f32 %v120_v19, 0.0 }
  0xa3   :  { %v121_v20 = vpop.f32.mrf.mxu0 }
  0xa4   :  { %v122_v21 = vadd.f32 %v596_v11, %v121_v20 }
  0xa6   :  { %v137_v23 = vmax.f32 %v122_v21, 0.0 }
  0xa8   :  { %v143_v24 = vpack.c.bf16 %v137_v23, %v136_v22 }
  0xaa   :  { %537 = vmatmul.msk.bf16.vlgmr.msra.gmra.mxu3 %vm182_vm1, %v143_v24 }
  0xab   :  { %v124_v25 = vpop.f32.mrf.mxu0 }
  0xac   :  { %v125_v26 = vadd.f32 %v596_v11, %v124_v25 }
  0xae   :  { %v138_v29 = vmax.f32 %v125_v26, 0.0 }
  0xb3   :  { %v126_v27 = vpop.f32.mrf.mxu0 }
  0xb4   :  { %v127_v28 = vadd.f32 %v596_v11, %v126_v27 }
  0xb6   :  { %v139_v30 = vmax.f32 %v127_v28, 0.0 }
  0xb8   :  { %v144_v31 = vpack.c.bf16 %v139_v30, %v138_v29 }
  0xba   :  { %538 = vmatmul.msk.bf16.gmra.mxu3 %vm182_vm1, %v144_v31 }
  0xbb   :  { %v129_v32 = vpop.f32.mrf.mxu0 }
  0xbc   :  { %v130_v33 = vadd.f32 %v596_v11, %v129_v32 }
  0xbe   :  { %v140_v36 = vmax.f32 %v130_v33, 0.0 }
  0xc3   :  { %v131_v34 = vpop.f32.mrf.mxu0 }
  0xc4   :  { %v132_v35 = vadd.f32 %v596_v11, %v131_v34 }
  0xc6   :  { %v141_v37 = vmax.f32 %v132_v35, 0.0 }
  0xc8   :  { %v145_v38 = vpack.c.bf16 %v141_v37, %v140_v36 }
  0xca   :  { %539 = vmatmul.msk.bf16.gmra.mxu3 %vm182_vm1, %v145_v38 }
 0x117   :  { %v204_v42 = vpop.f32.mrf.mxu1 }
 0x118   :  { %v205_v43 = vadd.f32 %v772_v40, %v204_v42 }
 0x11a   :  { %v540_v45 = vmul.f32 -1.442695, %v205_v43 }
 0x11c   :  { %599 = vpow2.f32 %v540_v45 }
 0x11f   :  { %v206_v47 = vpop.f32.mrf.mxu1 }
 0x120   :  { %v207_v48 = vadd.f32 %v772_v40, %v206_v47 }
 0x122   :  { %v600_v49 = vpop.eup %599  ;;  %v541_v50 = vmul.f32 -1.442695, %v207_v48 }
 0x123   :  { %v248_v51 = vadd.f32 1.0, %v600_v49 }
 0x124   :  { %601 = vpow2.f32 %v541_v50 }
 0x125   :  { %603 = vrcp.f32 %v248_v51  ;;  %v267_v0 = vand.u32 2147483648, %v248_v51  ;;  %vm261_vm3 = vweird.f32 %v248_v51  ;;  %v265_v2 = vand.u32 2147483647, %v248_v51 }
 0x127   :  { %v268_v11 = vor.u32 1.1754944e-38, %v267_v0  ;;  %vm266_vm6 = vcmp.eq.f32.partialorder %v265_v2, 8.507059e+37 }
 0x12a   :  { %v602_v52 = vpop.eup %601 }
 0x12b   :  { %v604_v53 = vpop.eup %603  ;;  %v249_v54 = vadd.f32 1.0, %v602_v52 }
 0x12c   :  { %v257_v55 = vmul.f32 %v604_v53, %v248_v51  ;;  %vm262_vm2 = vweird.f32 %v604_v53 }
 0x12d   :  { %605 = vrcp.f32 %v249_v54  ;;  %v209_v56 = vpop.f32.mrf.mxu3  ;;  %vm263_vm4 = vmor %vm261_vm3, %vm262_vm2  ;;  %v280_v5 = vand.u32 2147483647, %v249_v54  ;;  %v282_v6 = vand.u32 2147483648, %v249_v54  ;;  %vm276_vm7 = vweird.f32 %v249_v54 }
 0x12e   :  { %v258_v57 = vsub.f32 1.0, %v257_v55  ;;  %v777_v58 = vadd.f32 %v772_v40, %v209_v56 }
 0x12f   :  { %v283_v15 = vor.u32 1.1754944e-38, %v282_v6  ;;  %vm281_vm9 = vcmp.eq.f32.partialorder %v280_v5, 8.507059e+37 }
 0x130   :  { %v259_v59 = vmul.f32 %v604_v53, %v258_v57  ;;  %v542_v60 = vmul.f32 -1.442695, %v777_v58 }
 0x132   :  { %607 = vpow2.f32 %v542_v60  ;;  %v260_v62 = vadd.f32 %v604_v53, %v259_v59 }
 0x133   :  { %v606_v61 = vpop.eup %605 }
 0x134   :  { %v272_v63 = vmul.f32 %v606_v61, %v249_v54  ;;  %v264_v8 = vsel %vm263_vm4, %v604_v53, %v260_v62  ;;  %vm277_vm5 = vweird.f32 %v606_v61 }
 0x135   :  { %v211_v1 = vpop.f32.mrf.mxu3  ;;  %v269_v14 = vsel %vm266_vm6, %v268_v11, %v264_v8  ;;  %vm278_vm8 = vmor %vm276_vm7, %vm277_vm5 }
 0x136   :  { %v273_v3 = vsub.f32 1.0, %v272_v63  ;;  %v781_v4 = vadd.f32 %v772_v40, %v211_v1  ;;  %v376_v19 = vmul.f32 %v269_v14, %v205_v43 }
 0x138   :  { %v608_v7 = vpop.eup %607  ;;  %v274_v9 = vmul.f32 %v606_v61, %v273_v3  ;;  %v543_v10 = vmul.f32 -1.442695, %v781_v4 }
 0x139   :  { %v250_v12 = vadd.f32 1.0, %v608_v7 }
 0x13a   :  { %v275_v13 = vadd.f32 %v606_v61, %v274_v9  ;;  %609 = vpow2.f32 %v543_v10 }
 0x13b   :  { %611 = vrcp.f32 %v250_v12  ;;  %v297_v38 = vand.u32 2147483648, %v250_v12  ;;  %vm291_vm11 = vweird.f32 %v250_v12  ;;  %v295_v39 = vand.u32 2147483647, %v250_v12 }
 0x13c   :  { %v279_v16 = vsel %vm278_vm8, %v606_v61, %v275_v13 }
 0x13d   :  { %v284_v17 = vsel %vm281_vm9, %v283_v15, %v279_v16  ;;  %v214_v18 = vpop.f32.mrf.mxu3  ;;  %v298_v49 = vor.u32 1.1754944e-38, %v297_v38  ;;  %vm296_vm14 = vcmp.eq.f32.partialorder %v295_v39, 8.507059e+37 }
 0x13e   :  { %v377_v20 = vmul.f32 %v284_v17, %v207_v48  ;;  %v785_v21 = vadd.f32 %v772_v40, %v214_v18 }
 0x140   :  { %v610_v22 = vpop.eup %609  ;;  %v384_v23 = vpack.c.bf16 %v377_v20, %v376_v19  ;;  %v544_v24 = vmul.f32 -1.442695, %v785_v21 }
 0x141   :  { %v612_v25 = vpop.eup %611  ;;  %v251_v26 = vadd.f32 1.0, %v610_v22 }
 0x142   :  { %v287_v27 = vmul.f32 %v612_v25, %v250_v12  ;;  %613 = vpow2.f32 %v544_v24  ;;  %564 = vmatmul.msk.bf16.vlgmr.msrb.gmra.mxu1 %vm182_vm1, %v384_v23  ;;  %vm292_vm10 = vweird.f32 %v612_v25 }
 0x143   :  { %615 = vrcp.f32 %v251_v26  ;;  %vm796_vm12 = vmor %vm291_vm11, %vm292_vm10  ;;  %v310_v43 = vand.u32 2147483647, %v251_v26  ;;  %v312_v44 = vand.u32 2147483648, %v251_v26  ;;  %vm306_vm15 = vweird.f32 %v251_v26 }
 0x144   :  { %v288_v28 = vsub.f32 1.0, %v287_v27 }
 0x145   :  { %v216_v29 = vpop.f32.mrf.mxu3  ;;  %v313_v55 = vor.u32 1.1754944e-38, %v312_v44  ;;  %vm311_vm2 = vcmp.eq.f32.partialorder %v310_v43, 8.507059e+37 }
 0x146   :  { %v289_v30 = vmul.f32 %v612_v25, %v288_v28  ;;  %v790_v31 = vadd.f32 %v772_v40, %v216_v29 }
 0x148   :  { %v614_v32 = vpop.eup %613  ;;  %v545_v33 = vmul.f32 -1.442695, %v790_v31  ;;  %v290_v36 = vadd.f32 %v612_v25, %v289_v30 }
 0x149   :  { %v616_v34 = vpop.eup %615  ;;  %v793_v35 = vadd.f32 1.0, %v614_v32 }
 0x14a   :  { %v302_v37 = vmul.f32 %v616_v34, %v251_v26  ;;  %617 = vpow2.f32 %v545_v33  ;;  %v294_v46 = vsel %vm796_vm12, %v612_v25, %v290_v36  ;;  %vm307_vm13 = vweird.f32 %v616_v34 }
 0x14b   :  { %619 = vrcp.f32 %v793_v35  ;;  %v299_v54 = vsel %vm296_vm14, %v298_v49, %v294_v46  ;;  %vm308_vm0 = vmor %vm306_vm15, %vm307_vm13  ;;  %vm321_vm4 = vweird.f32 %v793_v35 }
 0x14c   :  { %v303_v41 = vsub.f32 1.0, %v302_v37  ;;  %v378_v61 = vmul.f32 %v299_v54, %v777_v58  ;;  %v327_v58 = vand.u32 2147483648, %v793_v35 }
 0x14d   :  { %v219_v45 = vpop.f32.mrf.mxu3 }
 0x14e   :  { %v304_v47 = vmul.f32 %v616_v34, %v303_v41  ;;  %v803_v48 = vadd.f32 %v772_v40, %v219_v45  ;;  %v328_v15 = vor.u32 1.1754944e-38, %v327_v58 }
 0x150   :  { %v618_v50 = vpop.eup %617  ;;  %v305_v51 = vadd.f32 %v616_v34, %v304_v47  ;;  %v546_v52 = vmul.f32 -1.442695, %v803_v48 }
 0x151   :  { %v620_v53 = vpop.eup %619  ;;  %v253_v56 = vadd.f32 1.0, %v618_v50 }
 0x152   :  { %v309_v57 = vsel %vm308_vm0, %v616_v34, %v305_v51  ;;  %v317_v59 = vmul.f32 %v620_v53, %v793_v35  ;;  %621 = vpow2.f32 %v546_v52  ;;  %vm322_vm3 = vweird.f32 %v620_v53  ;;  %v598_v51 = vld [vmem:[%s835_s6] ss:$0 sm:$0xff]  ;;  %s686_s6 = smov [#allocation5]  }
 0x153   :  { %v314_v60 = vsel %vm311_vm2, %v313_v55, %v309_v57  ;;  %623 = vrcp.f32 %v253_v56  ;;  %vm323_vm5 = vmor %vm321_vm4, %vm322_vm3  ;;  %v342_v11 = vand.u32 2147483648, %v253_v56  ;;  %v340_v14 = vand.u32 2147483647, %v253_v56  ;;  %s477_s28 = sshll.u32 %s686_s6, 4  ;;  %s478_s28 = int_to_ptr.vmem [resolvable:$true] %s477_s28 }
 0x154   :  { %v379_v62 = vmul.f32 %v314_v60, %v781_v4  ;;  %v318_v63 = vsub.f32 1.0, %v317_v59  ;;  %vm336_vm8 = vweird.f32 %v253_v56 }
 0x155   :  { %v221_v0 = vpop.f32.mrf.mxu3  ;;  %v343_v20 = vor.u32 1.1754944e-38, %v342_v11  ;;  %vm341_vm10 = vcmp.eq.f32.partialorder %v340_v14, 8.507059e+37 }
 0x156   :  { %v319_v1 = vmul.f32 %v620_v53, %v318_v63  ;;  %v810_v2 = vadd.f32 %v772_v40, %v221_v0  ;;  %v385_v3 = vpack.c.bf16 %v379_v62, %v378_v61  ;;  %v325_v40 = vand.u32 2147483647, %v793_v35 }
 0x158   :  { %v622_v5 = vpop.eup %621  ;;  %v547_v6 = vmul.f32 -1.442695, %v810_v2  ;;  %565 = vmatmul.msk.bf16.vlgmr.msra.gmra.mxu2 %vm182_vm1, %v385_v3  ;;  %v320_v9 = vadd.f32 %v620_v53, %v319_v1  ;;  %vm326_vm7 = vcmp.eq.f32.partialorder %v325_v40, 8.507059e+37 }
 0x159   :  { %v624_v7 = vpop.eup %623  ;;  %v254_v8 = vadd.f32 1.0, %v622_v5 }
 0x15a   :  { %v332_v10 = vmul.f32 %v624_v7, %v253_v56  ;;  %625 = vpow2.f32 %v547_v6  ;;  %v324_v12 = vsel %vm323_vm5, %v620_v53, %v320_v9  ;;  %vm337_vm6 = vweird.f32 %v624_v7 }
 0x15b   :  { %627 = vrcp.f32 %v254_v8  ;;  %v329_v19 = vsel %vm326_vm7, %v328_v15, %v324_v12  ;;  %vm338_vm9 = vmor %vm336_vm8, %vm337_vm6  ;;  %v357_v35 = vand.u32 2147483648, %v254_v8  ;;  %vm351_vm12 = vweird.f32 %v254_v8 }
 0x15c   :  { %v333_v4 = vsub.f32 1.0, %v332_v10  ;;  %v380_v26 = vmul.f32 %v329_v19, %v785_v21  ;;  %v355_v36 = vand.u32 2147483647, %v254_v8 }
 0x15e   :  { %v334_v13 = vmul.f32 %v624_v7, %v333_v4  ;;  %vm356_vm15 = vcmp.eq.f32.partialorder %v355_v36, 8.507059e+37 }
 0x160   :  { %v626_v16 = vpop.eup %625  ;;  %v335_v17 = vadd.f32 %v624_v7, %v334_v13 }
 0x161   :  { %v628_v18 = vpop.eup %627  ;;  %v255_v22 = vadd.f32 1.0, %v626_v16 }
 0x162   :  { %v339_v23 = vsel %vm338_vm9, %v624_v7, %v335_v17  ;;  %v347_v24 = vmul.f32 %v628_v18, %v254_v8  ;;  %vm352_vm11 = vweird.f32 %v628_v18 }
 0x163   :  { %v344_v25 = vsel %vm341_vm10, %v343_v20, %v339_v23  ;;  %629 = vrcp.f32 %v255_v22  ;;  %vm353_vm13 = vmor %vm351_vm12, %vm352_vm11  ;;  %v372_v38 = vand.u32 2147483648, %v255_v22  ;;  %v370_v21 = vand.u32 2147483647, %v255_v22 }
 0x164   :  { %v381_v27 = vmul.f32 %v344_v25, %v790_v31  ;;  %v348_v28 = vsub.f32 1.0, %v347_v24  ;;  %v358_v31 = vor.u32 1.1754944e-38, %v357_v35  ;;  %vm366_vm0 = vweird.f32 %v255_v22 }
 0x165   :  { %v373_v44 = vor.u32 1.1754944e-38, %v372_v38  ;;  %vm371_vm3 = vcmp.eq.f32.partialorder %v370_v21, 8.507059e+37 }
 0x166   :  { %v349_v29 = vmul.f32 %v628_v18, %v348_v28  ;;  %v386_v30 = vpack.c.bf16 %v381_v27, %v380_v26 }
 0x168   :  { %566 = vmatmul.msk.bf16.gmra.mxu2 %vm182_vm1, %v386_v30  ;;  %v350_v33 = vadd.f32 %v628_v18, %v349_v29 }
 0x169   :  { %v630_v32 = vpop.eup %629 }
 0x16a   :  { %v362_v34 = vmul.f32 %v630_v32, %v255_v22  ;;  %v354_v39 = vsel %vm353_vm13, %v628_v18, %v350_v33  ;;  %vm367_vm14 = vweird.f32 %v630_v32 }
 0x16b   :  { %v359_v43 = vsel %vm356_vm15, %v358_v31, %v354_v39  ;;  %vm368_vm2 = vmor %vm366_vm0, %vm367_vm14 }
 0x16c   :  { %v363_v37 = vsub.f32 1.0, %v362_v34  ;;  %v382_v47 = vmul.f32 %v359_v43, %v803_v48 }
 0x16e   :  { %v364_v41 = vmul.f32 %v630_v32, %v363_v37 }
 0x170   :  { %v365_v42 = vadd.f32 %v630_v32, %v364_v41 }
 0x172   :  { %v369_v45 = vsel %vm368_vm2, %v630_v32, %v365_v42 }
 0x173   :  { %v374_v46 = vsel %vm371_vm3, %v373_v44, %v369_v45 }
 0x174   :  { %v383_v49 = vmul.f32 %v374_v46, %v810_v2 }
 0x176   :  { %v387_v50 = vpack.c.bf16 %v383_v49, %v382_v47 }
 0x178   :  { %567 = vmatmul.msk.bf16.gmra.mxu2 %vm182_vm1, %v387_v50 }
 0x1bf   :  { %v445_v52 = vpop.f32.mrf.mxu1 }
 0x1c0   :  { %v446_v53 = vadd.f32 %v598_v51, %v445_v52 }
 0x1c2   :  { %465 = vst [vmem:[#allocation5] sm:$0xff] %v446_v53 }
 0x1c7   :  { %v447_v54 = vpop.f32.mrf.mxu1 }
 0x1c8   :  { %v448_v55 = vadd.f32 %v598_v51, %v447_v54 }
 0x1ca   :  { %466 = vst [vmem:[#allocation5 + $0x8] sm:$0xff] %v448_v55 }
 0x1db   :  { %v450_v56 = vpop.f32.mrf.mxu2 }
 0x1dc   :  { %v451_v57 = vadd.f32 %v598_v51, %v450_v56 }
 0x1de   :  { %467 = vst [vmem:[#allocation5 + $0x10] sm:$0xff] %v451_v57 }
 0x1e3   :  { %v452_v59 = vpop.f32.mrf.mxu2 }
 0x1e4   :  { %v453_v48 = vadd.f32 %v598_v51, %v452_v59 }
 0x1e6   :  { %468 = vst [vmem:[#allocation5 + $0x18] sm:$0xff] %v453_v48 }
 0x1eb   :  { %v455_v60 = vpop.f32.mrf.mxu2 }
 0x1ec   :  { %v456_v61 = vadd.f32 %v598_v51, %v455_v60 }
 0x1ee   :  { %469 = vst [vmem:[#allocation5 + $0x20] sm:$0xff] %v456_v61 }
 0x1f3   :  { %v457_v62 = vpop.f32.mrf.mxu2 }
 0x1f4   :  { %v458_v63 = vadd.f32 %v598_v51, %v457_v62 }
 0x1f6   :  { %470 = vst [vmem:[#allocation5 + $0x28] sm:$0xff] %v458_v63 }
 0x1fb   :  { %v460_v0 = vpop.f32.mrf.mxu2 }
 0x1fc   :  { %v461_v1 = vadd.f32 %v598_v51, %v460_v0 }
 0x1fe   :  { %471 = vst [vmem:[#allocation5 + $0x30] sm:$0xff] %v461_v1 }
 0x203   :  { %v462_v2 = vpop.f32.mrf.mxu2 }
 0x204   :  { %v463_v3 = vadd.f32 %v598_v51, %v462_v2 }
 0x206   :  { %472 = vst [vmem:[#allocation5 + $0x38] sm:$0xff] %v463_v3 }
 0x207   :  { %485 = dma.vmem_to_hbm [thread:$0]  %s478_s28, 1024, %s480_s8, [#allocation4], %s687_s9, %s687_s9, %s688_s10  }
 0x208   :  { %681 = dma.done.wait [#allocation4], 1024  }
 0x209   :  { %682 = vsyncadd [#allocation4], 4294966272 }
 0x20a   :  { %490 = vsyncpa [#allocation3], 1 }
 0x20b   :  { %491 = vsyncpa [#allocation4], 1 }

</bundles_post_ra>
